<compile_context>
chip_gen: v7x
topology: tpu7x:2x2x1
jax: 0.10.0
libtpu: 0.0.40
codegen_flags: <defaults>
</compile_context>

<pallas_src>
import functools

import jax
import jax.numpy as jnp
from jax.experimental import pallas as pl
from jax.experimental.pallas import tpu as pltpu


def _round_up(x, m):
    return (x + m - 1) // m * m


def _pick_band_rows(H, W, target_pixels=2048):
    """Largest divisor of H whose band has ~target_pixels output rows per matmul."""
    for cand in range(H, 0, -1):
        if H % cand == 0 and cand * W <= max(target_pixels, W):
            return cand
    return H


def _up_conv_kernel(x_ref, w_ref, b_ref, o_ref, *, band_rows):
    """One row band of fused 2x-nearest-upsample + 3x3 conv + bias + LeakyReLU(0.1).

    x_ref: (1, H+2, W+2, Cin)       zero-padded input image (resident per image)
    w_ref: (3, 3*Cin, Np)           parity-folded weights; K ordered (c, cin) per row shift
    b_ref: (1, Np)                  bias tiled over the 4 output parities (f32)
    o_ref: (1, band_rows*W, Np)     parity-packed, lane-dense output band
    """
    W = x_ref.shape[2] - 2
    cin = x_ref.shape[3]

    t = pl.program_id(1)
    r0 = pl.multiple_of(t * band_rows, band_rows)

    # Band + 1-row halo on each side (zero border already present in x).
    band = x_ref[0, pl.ds(r0, band_rows + 2), :, :]          # (band_rows+2, W+2, Cin)

    acc = jnp.zeros(o_ref.shape[1:], jnp.float32)            # (band_rows*W, Np)
    for r in range(3):                                        # static unroll: 3 MXU pushes
        rows = band[r:r + band_rows]                          # (band_rows, W+2, Cin)
        lhs = jnp.concatenate(
            [rows[:, c:c + W, :] for c in range(3)], axis=-1)  # (band_rows, W, 3*Cin)
        lhs = lhs.reshape(band_rows * W, 3 * cin)             # free when W % 8 == 0
        acc = acc + jnp.dot(lhs, w_ref[r], preferred_element_type=jnp.float32)

    acc = acc + b_ref[...].astype(jnp.float32)
    acc = jnp.where(acc > 0, acc, 0.1 * acc)                  # LeakyReLU(0.1) in f32
    o_ref[0] = acc.astype(o_ref.dtype)                        # lane-dense (Np % 128 == 0)


def _build_up_conv_matrices(w_oihw, b, cout_pad):
    """Fold the nearest-2x upsample into the conv weights (sub-pixel trick).

    For output parity (p, q), upsample+3x3-conv equals a conv over the ORIGINAL
    image with taps W_eff[p,q][r,c] = sum_{kh,kw} A[p,r,kh] * A[q,c,kw] * w[kh,kw],
    where r, c index the padded original image at offsets {-1, 0, +1}.

    Returns:
      w_mat: (3, 3*Cin, 4*cout_pad)   per row shift r; K ordered (c, cin);
                                      N ordered (p, q, cout)
      b_mat: (1, 4*cout_pad)
    """
    cout, cin = w_oihw.shape[0], w_oihw.shape[1]
    w_hwio = jnp.transpose(w_oihw, (2, 3, 1, 0))               # (3, 3, Cin, Cout)
    A = jnp.array([[[1., 0., 0.], [0., 1., 1.], [0., 0., 0.]],  # parity p = 0
                   [[0., 0., 0.], [1., 1., 0.], [0., 0., 1.]]], # parity p = 1
                  dtype=w_hwio.dtype)
    w_eff = jnp.einsum("prh,qcw,hwio->rcipqo", A, A, w_hwio)    # (3,3,Cin,2,2,Cout)
    w_eff = jnp.pad(w_eff, ((0, 0),) * 5 + ((0, cout_pad - cout),))
    w_mat = w_eff.reshape(3, 3 * cin, 4 * cout_pad)
    b_mat = jnp.tile(jnp.pad(b, (0, cout_pad - cout)), 4).reshape(1, 4 * cout_pad)
    return w_mat, b_mat


def _up_conv_pallas(x_pad, w_mat, b_mat, band_rows, out_dtype):
    N, Hp2, Wp2, Cin = x_pad.shape
    H, W = Hp2 - 2, Wp2 - 2
    _, K3, Np = w_mat.shape
    n_bands = H // band_rows
    kernel = functools.partial(_up_conv_kernel, band_rows=band_rows)
    return pl.pallas_call(
        kernel,
        out_shape=jax.ShapeDtypeStruct((N, H * W, Np), out_dtype),
        grid=(N, n_bands),
        in_specs=[
            # Padded image resident per batch element (block index ignores the band axis).
            pl.BlockSpec((1, Hp2, Wp2, Cin), lambda n, t: (n, 0, 0, 0)),
            pl.BlockSpec((3, K3, Np), lambda n, t: (0, 0, 0)),
            pl.BlockSpec((1, Np), lambda n, t: (0, 0)),
        ],
        out_specs=pl.BlockSpec((1, band_rows * W, Np), lambda n, t: (n, t, 0)),
        compiler_params=pltpu.CompilerParams(
            dimension_semantics=("parallel", "parallel"),       # batch and bands -> both TCs
            vmem_limit_bytes=32 * 1024 * 1024),                 # above the v5e 16 MiB default
    )(x_pad, w_mat, b_mat)


@functools.partial(jax.jit, static_argnames=("band_rows", "compute_dtype"))
def up_conv_forward(x_nchw, params, *, band_rows=None, compute_dtype=jnp.bfloat16):
    """up_conv forward. NCHW in / NCHW out to match the PyTorch module."""
    w_oihw, b = params["w"], params["b"]
    N, Cin, H, W = x_nchw.shape
    Cout = w_oihw.shape[0]
    cout_pad = _round_up(Cout * 4, 128) // 4                    # 4*cout_pad % 128 == 0
    if band_rows is None:
        band_rows = _pick_band_rows(H, W)
    assert H % band_rows == 0, "band_rows must divide H"

    w_mat, b_mat = _build_up_conv_matrices(w_oihw, b, cout_pad)
    w_mat = w_mat.astype(compute_dtype)
    b_mat = b_mat.astype(jnp.float32)

    # Single layout pass: NCHW -> NHWC, 1-px zero border, cast to compute dtype.
    # TODO(synk): accept/produce NHWC (or the parity-packed slab) end-to-end between
    #             layers to drop this pass and the epilogue transpose entirely.
    x_pad = jnp.pad(jnp.transpose(x_nchw, (0, 2, 3, 1)),
                    ((0, 0), (1, 1), (1, 1), (0, 0))).astype(compute_dtype)

    y = _up_conv_pallas(x_pad, w_mat, b_mat, band_rows, x_nchw.dtype)  # (N, H*W, 4*cout_pad)

    # Unpack parities, drop channel padding, NHWC->NCHW in one fused reshape/transpose.
    y = y.reshape(N, H, W, 2, 2, cout_pad)[..., :Cout]          # (N, H, W, p, q, Cout)
    y = jnp.transpose(y, (0, 5, 1, 3, 2, 4)).reshape(N, Cout, 2 * H, 2 * W)
    return y


def init_up_conv_params(key, ch_in, ch_out, dtype=jnp.float32):
    """Match nn.Conv2d(ch_in, ch_out, 3) default init: U(+-1/sqrt(fan_in))."""
    kw, kb = jax.random.split(key)
    fan_in = ch_in * 3 * 3
    bound = 1.0 / (fan_in ** 0.5)
    w = jax.random.uniform(kw, (ch_out, ch_in, 3, 3), dtype, -bound, bound)  # OIHW
    b = jax.random.uniform(kb, (ch_out,), dtype, -bound, bound)
    return {"w": w, "b": b}


def _reference_forward(x_nchw, params):
    """Pure-JAX reference: nearest-2x upsample -> 3x3 conv -> bias -> LeakyReLU(0.1)."""
    w, b = params["w"], params["b"]
    x_up = jnp.repeat(jnp.repeat(x_nchw, 2, axis=2), 2, axis=3)
    y = jax.lax.conv_general_dilated(
        x_up, w, window_strides=(1, 1), padding=((1, 1), (1, 1)),
        dimension_numbers=("NCHW", "OIHW", "NCHW"))
    y = y + b[None, :, None, None]
    return jnp.where(y > 0, y, 0.1 * y)


if __name__ == "__main__":
    key = jax.random.PRNGKey(0)
    k_params, k_x = jax.random.split(key)

    N, C_IN, C_OUT, H, W = 2, 4, 8, 16, 16
    params = init_up_conv_params(k_params, C_IN, C_OUT)
    x = jax.random.normal(k_x, (N, C_IN, H, W), jnp.float32)
    ref = _reference_forward(x, params)

    # f32 compute path: tight check of the fused algorithm (parity fold, halo rows,
    # bias, LeakyReLU) with 2 row bands per image exercising the banded grid.
    out_f32 = jax.block_until_ready(
        up_conv_forward(x, params, band_rows=8, compute_dtype=jnp.float32))
    assert out_f32.shape == (N, C_OUT, 2 * H, 2 * W), out_f32.shape
    err_f32 = float(jnp.max(jnp.abs(out_f32 - ref)))
    assert jnp.allclose(out_f32, ref, atol=1e-3, rtol=1e-3), f"f32 mismatch: {err_f32}"

    # Default path: bf16 operands + f32 accumulation (full-rate MXU on v6e/v7x).
    out_bf16 = jax.block_until_ready(up_conv_forward(x, params, band_rows=8))
    err_bf16 = float(jnp.max(jnp.abs(out_bf16 - ref)))
    assert jnp.allclose(out_bf16, ref, atol=5e-2, rtol=5e-2), f"bf16 mismatch: {err_bf16}"

    # Default band heuristic (single band at this tiny H) also runs cleanly.
    out_default = jax.block_until_ready(up_conv_forward(x, params))
    assert out_default.shape == (N, C_OUT, 2 * H, 2 * W), out_default.shape

    print("KERNEL_OK")
</pallas_src>

<mosaic_0001>
module attributes {stable_mosaic.version = 11 : i64} {
  func.func @_up_conv_kernel(%arg0: i32, %arg1: i32, %arg2: memref<1x18x18x4xf32, #tpu.memory_space<vmem>>, %arg3: memref<3x12x128xf32, #tpu.memory_space<vmem>>, %arg4: memref<1x128xf32, #tpu.memory_space<vmem>>, %arg5: memref<1x128x128xf32, #tpu.memory_space<vmem>>) attributes {dimension_semantics = [#tpu.dimension_semantics<parallel>, #tpu.dimension_semantics<parallel>], iteration_bounds = array<i64: 2, 2>, scalar_prefetch = 0 : i64, scratch_operands = 0 : i64, tpu.core_type = #tpu.core_type<tc>, window_params = [{transform_indices = @transform_0, window_bounds = array<i64: 1, 18, 18, 4>}, {pipeline_mode = #tpu.pipeline_mode<synchronous>, transform_indices = @transform_1, window_bounds = array<i64: 3, 12, 128>}, {pipeline_mode = #tpu.pipeline_mode<synchronous>, transform_indices = @transform_2, window_bounds = array<i64: 1, 128>}, {transform_indices = @transform_3, window_bounds = array<i64: 1, 128, 128>}]} {
    %c8_i32 = arith.constant 8 : i32
    %0 = arith.muli %arg1, %c8_i32 : i32
    %1 = tpu.assume_multiple %0, 8 : i32
    %c0 = arith.constant 0 : index
    %2 = arith.index_cast %1 : i32 to index
    %c0_0 = arith.constant 0 : index
    %c0_1 = arith.constant 0 : index
    %3 = vector.load %arg2[%c0, %2, %c0_0, %c0_1] : memref<1x18x18x4xf32, #tpu.memory_space<vmem>>, vector<1x10x18x4xf32>
    %4 = vector.shape_cast %3 : vector<1x10x18x4xf32> to vector<10x18x4xf32>
    %cst = arith.constant 0.000000e+00 : f32
    %5 = vector.broadcast %cst : f32 to vector<128x128xf32>
    %6 = vector.extract_strided_slice %4 {offsets = [0, 0, 0], sizes = [8, 18, 4], strides = [1, 1, 1]} : vector<10x18x4xf32> to vector<8x18x4xf32>
    %7 = vector.extract_strided_slice %6 {offsets = [0, 0, 0], sizes = [8, 16, 4], strides = [1, 1, 1]} : vector<8x18x4xf32> to vector<8x16x4xf32>
    %8 = vector.extract_strided_slice %6 {offsets = [0, 1, 0], sizes = [8, 16, 4], strides = [1, 1, 1]} : vector<8x18x4xf32> to vector<8x16x4xf32>
    %9 = vector.extract_strided_slice %6 {offsets = [0, 2, 0], sizes = [8, 16, 4], strides = [1, 1, 1]} : vector<8x18x4xf32> to vector<8x16x4xf32>
    %10 = tpu.concatenate %7, %8, %9 in 2 : vector<8x16x4xf32>, vector<8x16x4xf32>, vector<8x16x4xf32> -> vector<8x16x12xf32>
    %11 = vector.shape_cast %10 : vector<8x16x12xf32> to vector<128x12xf32>
    %c0_2 = arith.constant 0 : index
    %c0_3 = arith.constant 0 : index
    %c0_4 = arith.constant 0 : index
    %12 = vector.load %arg3[%c0_2, %c0_3, %c0_4] : memref<3x12x128xf32, #tpu.memory_space<vmem>>, vector<1x12x128xf32>
    %13 = vector.shape_cast %12 : vector<1x12x128xf32> to vector<12x128xf32>
    %cst_5 = arith.constant dense<0.000000e+00> : vector<128x128xf32>
    %14 = tpu.matmul %11, %13, %cst_5 {dimension_numbers = #tpu.dot_dimension_numbers<[1], [0], [0], [1], [0, 0, 1, 1], [], []>} : vector<128x12xf32>, vector<12x128xf32>, vector<128x128xf32> -> vector<128x128xf32>
    %15 = arith.addf %5, %14 : vector<128x128xf32>
    %16 = vector.extract_strided_slice %4 {offsets = [1, 0, 0], sizes = [8, 18, 4], strides = [1, 1, 1]} : vector<10x18x4xf32> to vector<8x18x4xf32>
    %17 = vector.extract_strided_slice %16 {offsets = [0, 0, 0], sizes = [8, 16, 4], strides = [1, 1, 1]} : vector<8x18x4xf32> to vector<8x16x4xf32>
    %18 = vector.extract_strided_slice %16 {offsets = [0, 1, 0], sizes = [8, 16, 4], strides = [1, 1, 1]} : vector<8x18x4xf32> to vector<8x16x4xf32>
    %19 = vector.extract_strided_slice %16 {offsets = [0, 2, 0], sizes = [8, 16, 4], strides = [1, 1, 1]} : vector<8x18x4xf32> to vector<8x16x4xf32>
    %20 = tpu.concatenate %17, %18, %19 in 2 : vector<8x16x4xf32>, vector<8x16x4xf32>, vector<8x16x4xf32> -> vector<8x16x12xf32>
    %21 = vector.shape_cast %20 : vector<8x16x12xf32> to vector<128x12xf32>
    %c1 = arith.constant 1 : index
    %c0_6 = arith.constant 0 : index
    %c0_7 = arith.constant 0 : index
    %22 = vector.load %arg3[%c1, %c0_6, %c0_7] : memref<3x12x128xf32, #tpu.memory_space<vmem>>, vector<1x12x128xf32>
    %23 = vector.shape_cast %22 : vector<1x12x128xf32> to vector<12x128xf32>
    %cst_8 = arith.constant dense<0.000000e+00> : vector<128x128xf32>
    %24 = tpu.matmul %21, %23, %cst_8 {dimension_numbers = #tpu.dot_dimension_numbers<[1], [0], [0], [1], [0, 0, 1, 1], [], []>} : vector<128x12xf32>, vector<12x128xf32>, vector<128x128xf32> -> vector<128x128xf32>
    %25 = arith.addf %15, %24 : vector<128x128xf32>
    %26 = vector.extract_strided_slice %4 {offsets = [2, 0, 0], sizes = [8, 18, 4], strides = [1, 1, 1]} : vector<10x18x4xf32> to vector<8x18x4xf32>
    %27 = vector.extract_strided_slice %26 {offsets = [0, 0, 0], sizes = [8, 16, 4], strides = [1, 1, 1]} : vector<8x18x4xf32> to vector<8x16x4xf32>
    %28 = vector.extract_strided_slice %26 {offsets = [0, 1, 0], sizes = [8, 16, 4], strides = [1, 1, 1]} : vector<8x18x4xf32> to vector<8x16x4xf32>
    %29 = vector.extract_strided_slice %26 {offsets = [0, 2, 0], sizes = [8, 16, 4], strides = [1, 1, 1]} : vector<8x18x4xf32> to vector<8x16x4xf32>
    %30 = tpu.concatenate %27, %28, %29 in 2 : vector<8x16x4xf32>, vector<8x16x4xf32>, vector<8x16x4xf32> -> vector<8x16x12xf32>
    %31 = vector.shape_cast %30 : vector<8x16x12xf32> to vector<128x12xf32>
    %c2 = arith.constant 2 : index
    %c0_9 = arith.constant 0 : index
    %c0_10 = arith.constant 0 : index
    %32 = vector.load %arg3[%c2, %c0_9, %c0_10] : memref<3x12x128xf32, #tpu.memory_space<vmem>>, vector<1x12x128xf32>
    %33 = vector.shape_cast %32 : vector<1x12x128xf32> to vector<12x128xf32>
    %cst_11 = arith.constant dense<0.000000e+00> : vector<128x128xf32>
    %34 = tpu.matmul %31, %33, %cst_11 {dimension_numbers = #tpu.dot_dimension_numbers<[1], [0], [0], [1], [0, 0, 1, 1], [], []>} : vector<128x12xf32>, vector<12x128xf32>, vector<128x128xf32> -> vector<128x128xf32>
    %35 = arith.addf %25, %34 : vector<128x128xf32>
    %c0_12 = arith.constant 0 : index
    %c0_13 = arith.constant 0 : index
    %36 = vector.load %arg4[%c0_12, %c0_13] : memref<1x128xf32, #tpu.memory_space<vmem>>, vector<1x128xf32>
    %37 = vector.broadcast %36 : vector<1x128xf32> to vector<128x128xf32>
    %38 = arith.addf %35, %37 : vector<128x128xf32>
    %cst_14 = arith.constant 0.000000e+00 : f32
    %39 = vector.broadcast %cst_14 : f32 to vector<128x128xf32>
    %40 = arith.cmpf ogt, %38, %39 : vector<128x128xf32>
    %cst_15 = arith.constant 1.000000e-01 : f32
    %41 = vector.broadcast %cst_15 : f32 to vector<128x128xf32>
    %42 = arith.mulf %41, %38 : vector<128x128xf32>
    %43 = arith.select %40, %38, %42 : vector<128x128xi1>, vector<128x128xf32>
    %c0_16 = arith.constant 0 : index
    %c0_17 = arith.constant 0 : index
    %c0_18 = arith.constant 0 : index
    %44 = vector.load %arg5[%c0_16, %c0_17, %c0_18] : memref<1x128x128xf32, #tpu.memory_space<vmem>>, vector<1x128x128xf32>
    %45 = vector.shape_cast %44 : vector<1x128x128xf32> to vector<128x128xf32>
    %46 = vector.shape_cast %43 : vector<128x128xf32> to vector<1x128x128xf32>
    tpu.vector_store %arg5[%c0_16, %c0_17, %c0_18], %46 {strides = array<i32>} : memref<1x128x128xf32, #tpu.memory_space<vmem>>, vector<1x128x128xf32>,
    return
  }
  func.func @transform_0(%arg0: i32, %arg1: i32) -> (i32, i32, i32, i32) {
    %c0_i32 = arith.constant 0 : i32
    %c0_i32_0 = arith.constant 0 : i32
    %c0_i32_1 = arith.constant 0 : i32
    %c0_i32_2 = arith.constant 0 : i32
    return %arg0, %c0_i32, %c0_i32_0, %c0_i32_1 : i32, i32, i32, i32
  }
  func.func @transform_1(%arg0: i32, %arg1: i32) -> (i32, i32, i32) {
    %c0_i32 = arith.constant 0 : i32
    %c0_i32_0 = arith.constant 0 : i32
    %c0_i32_1 = arith.constant 0 : i32
    %c0_i32_2 = arith.constant 0 : i32
    return %c0_i32, %c0_i32_0, %c0_i32_1 : i32, i32, i32
  }
  func.func @transform_2(%arg0: i32, %arg1: i32) -> (i32, i32) {
    %c0_i32 = arith.constant 0 : i32
    %c0_i32_0 = arith.constant 0 : i32
    %c0_i32_1 = arith.constant 0 : i32
    return %c0_i32, %c0_i32_0 : i32, i32
  }
  func.func @transform_3(%arg0: i32, %arg1: i32) -> (i32, i32, i32) {
    %c0_i32 = arith.constant 0 : i32
    %c0_i32_0 = arith.constant 0 : i32
    return %arg0, %arg1, %c0_i32 : i32, i32, i32
  }
}

</mosaic_0001>

<bundles_post_ra>
// kernel: tile.9
= control target key start
LH: loop header
LB: loop body
LE: loop exit
PB: predicated region body
PF: predicated region fallthrough
CT: control target
= control target key end

     0   :  { %vm7_vm0 = vcmask 261120   ;;  %s37_s8 = smov 32   ;;  %s38_s9 = smov 64   ;;  %vm13_vm1 = vcmask 1048320   ;;  %vm19_vm2 = vcmask 785920   ;;  %vm25_vm3 = vcmask 523520   ;;  %s55_s0 = inlined_call_operand.vmem [shape: f32[4,32], index: 0, kind: input, shape index: {}]   ;;  %s56_s1 = inlined_call_operand.vmem [shape: f32[1,128], index: 1, kind: output, shape index: {}]  }
   0x1   :  { %v4_v0 = vld [vmem:[%s55_s0] sm:$0xf]  ;;  %s36_s0 = smov 96  }
   0x2   :  { %5 = vst [vmem:[#allocation1] sm:$0xf] %v4_v0 }
   0x9   :  { %v10_v1 = vld [vmem:[#allocation1 + $0x3] sm:$0x1]   ;;  %v22_v2 = vld [vmem:[#allocation1 + $0x1] sm:$0x1]   ;;  %v6_v3 = vld [vmem:[#allocation1] sm:$0x1]  }
   0xa   :  { %11 = vrot.lane.b32.xlu0 %v10_v1, %s36_s0  ;;  %23 = vrot.lane.b32.xlu1 %v22_v2, %s37_s8  ;;  %v16_v4 = vld [vmem:[#allocation1 + $0x2] sm:$0x1]   ;;  %8 = vst.msk [vmem:[#allocation0] sm:$0x1] %vm7_vm0, %v6_v3  }
   0xe   :  { %17 = vrot.lane.b32.xlu0 %v16_v4, %s38_s9 }
  0x7c   :  { %v12_v5 = vpop.permute.xlu0 %11   ;;  %v24_v6 = vpop.permute.xlu1 %23  }
  0x7d   :  { %14 = vst.msk [vmem:[#allocation0] sm:$0x1] %vm13_vm1, %v12_v5  }
  0x80   :  { %v18_v7 = vpop.permute.xlu0 %17  }
  0x81   :  { %20 = vst.msk [vmem:[#allocation0] sm:$0x1] %vm19_vm2, %v18_v7  }
  0x82   :  { %26 = vst.msk [vmem:[#allocation0] sm:$0x1] %vm25_vm3, %v24_v6  }
  0x89   :  { %v30_v8 = vld [vmem:[#allocation0] sm:$0x1] }
  0x8a   :  { %32 = vst [vmem:[%s56_s1] sm:$0x1] %v30_v8 }

// kernel: tile.8
= control target key start
LH: loop header
LB: loop body
LE: loop exit
PB: predicated region body
PF: predicated region fallthrough
CT: control target
= control target key end

     0   :  { %s22_s0 = inlined_call_operand.vmem [shape: f32[32], index: 0, kind: input, shape index: {}]   ;;  %s23_s1 = inlined_call_operand.vmem [shape: f32[4,32], index: 1, kind: output, shape index: {}]  }
   0x1   :  { %v4_v0 = vld [vmem:[%s22_s0] ss:$0 sm:$0xff] }
   0x2   :  { %5 = vst [vmem:[%s23_s1] sm:$0xf] %v4_v0 }

// kernel: up_conv_forward.1
= control target key start
LH: loop header
LB: loop body
LE: loop exit
PB: predicated region body
PF: predicated region fallthrough
CT: control target
= control target key end

     0   :  { %s1590_s12 = smov 0   ;;  %s1592_s13 = smov 0   ;;  %s2061_s0 = inlined_call_operand.vmem [shape: f32[2,18,18,4], index: 0, kind: input, shape index: {}]   ;;  %s2062_s1 = inlined_call_operand.vmem [shape: f32[3,12,128], index: 1, kind: input, shape index: {}]   ;;  %s2063_s2 = inlined_call_operand.vmem [shape: f32[1,128], index: 2, kind: input, shape index: {}]   ;;  %s2064_s3 = inlined_call_operand.vmem [shape: f32[2,256,128], index: 3, kind: output, shape index: {}]  }
   0x1   :  { %s1594_s14 = smov 0   ;;  %s1596_s15 = smov 0  }
   0x2   :  { %s1598_s16 = smov 0  }
   0x3 LB: > { %s22_s17 = sadd.s32 1, %s1557_s14  ;;  %s25_s18 = sadd.s32 1, %s1561_s15  ;;  %s1565_s16 = sphi %s1598_s16, %s13_s16   ;;  %s1561_s15 = sphi %s1596_s15, %s2070_s15   ;;  %s1557_s14 = sphi %s1594_s14, %s2069_s14   ;;  %s1553_s13 = sphi %s1592_s13, %s2068_s13   ;;  %s1549_s12 = sphi %s1590_s12, %s2067_s12  }
   0x4   : > { %p23_p0 = scmp.ge.s32.totalorder %s22_s17, 2  ;;  %p1228_p1 = scmp.ge.s32.totalorder %s1565_s16, 1 }
   0x5   : > { %p151_p2 = scmp.lt.s32.totalorder %s1565_s16, 5 }
   0x6   : > { %s2072_s17 = smov (%p23_p0, %s22_s17), 0  ;;  %s2074_s18 = smov (!%p23_p0, %s25_s18), %s1561_s15 }
   0x7   : > { %p152_p3 = pnand %p1228_p1, %p151_p2  ;;  %p27_p4 = scmp.ge.s32.totalorder %s2074_s18, 2 }
   0x8   : > { %p179_p5 = scmp.lt.s32.totalorder (!%p152_p3), %s1553_s13, 1  ;;  %s1234_s19 = smul.u32 (!%p152_p3), 192, %s1549_s12  ;;  %v1235_v0 = vld [vmem:[%s2062_s1 + $0x10] sm:$0xff] (!%p152_p3)  ;;  %v1236_v1 = vld [vmem:[%s2062_s1 + $0x18] sm:$0xf] (!%p152_p3)  ;;  %v463_v2 = vld [vmem:[%s2062_s1] sm:$0xff] (!%p152_p3) }
   0x9   : > { %s2076_s18 = smov (%p27_p4, %s2074_s18), 0  ;;  %155 = sbr.rel (%p152_p3) target bundleno = 447 (0x1bf), region = 32 }
   0xa   : > { %vm546_vm0 = vcmask (!%p152_p3), 1043456   ;;  %v1431_v3 = vpack.c.bf16 (!%p152_p3), %v1236_v1, %v1235_v0  ;;  %v464_v4 = vld [vmem:[%s2062_s1 + $0x8] sm:$0xf] (!%p152_p3)  ;;  %vm1567_vm1 = vmmov (!%p152_p3), 1   ;;  %vm251_vm3 = vcmask (!%p152_p3), 1046528   ;;  %s1568_s6 = smov (!%p152_p3), 4  }
   0xb   : > { %vm1643_vm2 = vmpackc.low (!%p152_p3), %vm546_vm0, %vm1567_vm1  ;;  %v1647_v6 = vpack.c.bf16 (!%p152_p3), %v464_v4, %v463_v2  ;;  %vm340_vm4 = vcmask (!%p152_p3), 1045504   ;;  %s1569_s7 = smov (!%p152_p3), 8   ;;  %v1271_v58 = vld [vmem:[%s2062_s1 + $0x20] sm:$0xff] (!%p152_p3)  ;;  %v1272_v59 = vld [vmem:[%s2062_s1 + $0x28] sm:$0xf] (!%p152_p3)  ;;  %vm429_vm5 = vcmask (!%p152_p3), 31744  }
   0xc   : > { %1433 = vmatprep.subr.msk.bf16.mxu1 (!%p152_p3), %vm1643_vm2, %v1431_v3  ;;  %vm446_vm6 = vcmask (!%p152_p3), 64512   ;;  %vm497_vm7 = vcmask (!%p152_p3), 97280  }
   0xd   : > { %1439 = vmatprep.subr.msk.bf16.mxu0 (!%p152_p3), %vm1643_vm2, %v1647_v6  ;;  %1436 = vmatpush3.bf16.msk.msra.mxu1 (!%p152_p3), %vm1643_vm2, %v1431_v3 }
   0xe   : > { %1442 = vmatpush3.bf16.msk.msra.mxu0 (!%p152_p3), %vm1643_vm2, %v1647_v6  ;;  %1449 = vmatprep.subr.msk.bf16.mxu1 (!%p152_p3), %vm1643_vm2, %v1647_v6 }
  0x10   : > { %s2078_s13 = smov (!%p179_p5, %s1553_s13), 1 }
  0x11   : > { %s1483_s20 = smul.u32 432, %s2078_s13 }
  0x13   : > { %s183_s29 = scalar_lea.vmem %s2061_s0, %s1483_s20  ;;  %s1231_s20 = sshll.u32 %s2078_s13, 5 }
  0x14   : > { %s1641_s5 = scalar_lea.vmem %s183_s29, %s1234_s19  ;;  %s1230_s19 = sshll.u32 %s1549_s12, 4 }
  0x15   : > { %v1650_v7 = vld [vmem:[%s1641_s5 + $0x8] sm:$0xff]  ;;  %v199_v8 = vld [vmem:[%s1641_s5 + $0x10] sm:$0x3]  ;;  %v1654_v9 = vld [vmem:[%s1641_s5] sm:$0xff]  ;;  %p187_p6 = scmp.lt.s32.totalorder %s1230_s19, 31 }
  0x16   : > { %v253_v10 = vrot.slane %v1650_v7, 1  ;;  %v255_v11 = vrot.slane %v199_v8, 1  ;;  %v252_v12 = vrot.slane %v1654_v9, 1  ;;  %v1661_v13 = vld [vmem:[%s1641_s5 + $0x20] sm:$0xff]  ;;  %v202_v14 = vld [vmem:[%s1641_s5 + $0x28] sm:$0x3] }
  0x17   : > { %v258_v15 = vrot.slane %v1661_v13, 1  ;;  %v260_v16 = vrot.slane %v202_v14, 1  ;;  %v1671_v17 = vld [vmem:[%s1641_s5 + $0x18] sm:$0xff]  ;;  %v347_v21 = vrot.slane %v1661_v13, 2  ;;  %v341_v22 = vrot.slane %v1654_v9, 2  ;;  %v1699_v33 = vld [vmem:[%s1641_s5 + $0x30] sm:$0xff] }
  0x18   : > { %v256_v18 = vsel %vm251_vm3, %v253_v10, %v255_v11  ;;  %v254_v19 = vsel %vm251_vm3, %v252_v12, %v253_v10  ;;  %v257_v20 = vrot.slane %v1671_v17, 1  ;;  %v346_v25 = vrot.slane %v1671_v17, 2  ;;  %v1695_v31 = vld [vmem:[%s1641_s5 + $0x38] sm:$0xff]  ;;  %v205_v32 = vld [vmem:[%s1641_s5 + $0x40] sm:$0x3]  ;;  %v1711_v40 = vld [vmem:[%s1641_s5 + $0x50] sm:$0xff] }
  0x19   : > { %294 = vrot.lane.b32.xlu1 %v256_v18, %s1568_s6  ;;  %292 = vrot.lane.b32.xlu0 %v254_v19, %s1568_s6  ;;  %v261_v23 = vsel %vm251_vm3, %v258_v15, %v260_v16  ;;  %v342_v26 = vrot.slane %v1650_v7, 2  ;;  %v349_v29 = vrot.slane %v202_v14, 2  ;;  %v344_v30 = vrot.slane %v199_v8, 2  ;;  %v208_v41 = vld [vmem:[%s1641_s5 + $0x58] sm:$0x3]  ;;  %v1718_v46 = vld [vmem:[%s1641_s5 + $0x48] sm:$0xff] }
  0x1a   : > { %v259_v24 = vsel %vm251_vm3, %v257_v20, %v258_v15  ;;  %v348_v27 = vsel %vm340_vm4, %v346_v25, %v347_v21  ;;  %v263_v34 = vrot.slane %v1695_v31, 1  ;;  %v265_v35 = vrot.slane %v205_v32, 1  ;;  %v1721_v47 = vld [vmem:[%s1641_s5 + $0xc8] sm:$0xff]  ;;  %v1724_v48 = vld [vmem:[%s1641_s5 + $0xd0] sm:$0x3]  ;;  %v1732_v53 = vld [vmem:[%s1641_s5 + $0xe0] sm:$0xff] }
  0x1b   : > { %v343_v28 = vsel %vm340_vm4, %v341_v22, %v342_v26  ;;  %v350_v36 = vsel %vm340_vm4, %v347_v21, %v349_v29  ;;  %v345_v37 = vsel %vm340_vm4, %v342_v26, %v344_v30  ;;  %v262_v38 = vrot.slane %v1699_v33, 1  ;;  %v226_v54 = vld [vmem:[%s1641_s5 + $0xe8] sm:$0x3]  ;;  %v211_v14 = vld [vmem:[%s1641_s5 + $0x70] sm:$0x3]  ;;  %v1769_v15 = vld [vmem:[%s1641_s5 + $0x60] sm:$0xff] }
  0x1c   : > { %v266_v39 = vsel %vm251_vm3, %v263_v34, %v265_v35  ;;  %v352_v43 = vrot.slane %v1695_v31, 2  ;;  %v354_v44 = vrot.slane %v205_v32, 2  ;;  %v351_v45 = vrot.slane %v1699_v33, 2  ;;  %v1758_v8 = vld [vmem:[%s1641_s5 + $0x68] sm:$0xff]  ;;  %v1796_v30 = vld [vmem:[%s1641_s5 + $0x78] sm:$0xff]  ;;  %s2080_s19 = smov (!%p187_p6, %s1230_s19), 31 }
  0x1d   : > { %298 = vrot.lane.b32.xlu1 %v261_v23, %s1568_s6  ;;  %296 = vrot.lane.b32.xlu0 %v259_v24, %s1568_s6  ;;  %v264_v42 = vsel %vm251_vm3, %v262_v38, %v263_v34  ;;  %v268_v49 = vrot.slane %v1711_v40, 1  ;;  %v270_v50 = vrot.slane %v208_v41, 1  ;;  %v267_v51 = vrot.slane %v1718_v46, 1  ;;  %v214_v29 = vld [vmem:[%s1641_s5 + $0x88] sm:$0x3]  ;;  %s190_s21 = sadd.s32 %s1231_s20, %s2080_s19 }
  0x1e   : > { %v469_v52 = vrot.slane %v1721_v47, 1  ;;  %v355_v55 = vsel %vm340_vm4, %v352_v43, %v354_v44  ;;  %v353_v56 = vsel %vm340_vm4, %v351_v45, %v352_v43  ;;  %v471_v57 = vrot.slane %v1724_v48, 1  ;;  %v1811_v44 = vld [vmem:[%s1641_s5 + $0x98] sm:$0xff]  ;;  %v217_v45 = vld [vmem:[%s1641_s5 + $0xa0] sm:$0x3]  ;;  %s1232_s24 = sshll.u32 %s190_s21, 3 }
  0x1f   : > { %v357_v60 = vrot.slane %v1711_v40, 2  ;;  %v853_v62 = vrot.slane %v1732_v53, 1  ;;  %v855_v63 = vrot.slane %v226_v54, 1  ;;  %v271_v0 = vsel %vm251_vm3, %v268_v49, %v270_v50  ;;  %s2014_s25 = scalar_lea.vmem %s2064_s3, %s1232_s24 }
  0x20   : > { %v1748_v61 = vsel %vm251_vm3, %v469_v52, %v471_v57  ;;  %v269_v1 = vsel %vm251_vm3, %v267_v51, %v268_v49  ;;  %v359_v2 = vrot.slane %v208_v41, 2  ;;  %v864_v3 = vrot.slane %v1732_v53, 2  ;;  %v1815_v49 = vld [vmem:[%s1641_s5 + $0x90] sm:$0xff] }
  0x21   : > { %385 = vrot.lane.b32.xlu1 %v348_v27, %s1569_s7  ;;  %381 = vrot.lane.b32.xlu0 %v343_v28, %s1569_s7  ;;  %v356_v4 = vrot.slane %v1718_v46, 2  ;;  %v1763_v10 = vsel %vm251_vm3, %v853_v62, %v855_v63  ;;  %v866_v11 = vrot.slane %v226_v54, 2  ;;  %v1765_v12 = vpack.c.bf16 %v1272_v59, %v1271_v58  ;;  %v1792_v28 = vld [vmem:[%s1641_s5 + $0x80] sm:$0xff] }
  0x22   : > { %v273_v18 = vrot.slane %v1758_v8, 1  ;;  %v360_v19 = vsel %vm340_vm4, %v357_v60, %v359_v2  ;;  %v275_v21 = vrot.slane %v211_v14, 1  ;;  %v272_v22 = vrot.slane %v1769_v15, 1  ;;  %v1834_v2 = vld [vmem:[%s1641_s5 + $0xa8] sm:$0xff] }
  0x23   : > { %v1774_v16 = vsel %vm340_vm4, %v864_v3, %v866_v11  ;;  %1445 = vmatprep.subr.msk.bf16.mxu0 %vm1643_vm2, %v1765_v12  ;;  %v358_v20 = vsel %vm340_vm4, %v356_v4, %v357_v60  ;;  %v362_v23 = vrot.slane %v1758_v8, 2  ;;  %v364_v26 = vrot.slane %v211_v14, 2 }
  0x24   : > { %v276_v24 = vsel %vm251_vm3, %v273_v18, %v275_v21  ;;  %v274_v25 = vsel %vm251_vm3, %v272_v22, %v273_v18  ;;  %v361_v27 = vrot.slane %v1769_v15, 2  ;;  %v278_v32 = vrot.slane %v1792_v28, 1 }
  0x25   : > { %387 = vrot.lane.b32.xlu1 %v350_v36, %s1569_s7  ;;  %383 = vrot.lane.b32.xlu0 %v345_v37, %s1569_s7  ;;  %v365_v34 = vsel %vm340_vm4, %v362_v23, %v364_v26  ;;  %v280_v36 = vrot.slane %v214_v29, 1  ;;  %v277_v37 = vrot.slane %v1796_v30, 1  ;;  %v367_v38 = vrot.slane %v1792_v28, 2 }
  0x26   : > { %v363_v35 = vsel %vm340_vm4, %v361_v27, %v362_v23  ;;  %v366_v43 = vrot.slane %v1796_v30, 2  ;;  %v283_v50 = vrot.slane %v1811_v44, 1  ;;  %v372_v57 = vrot.slane %v1811_v44, 2 }
  0x27   : > { %v279_v41 = vsel %vm251_vm3, %v277_v37, %v278_v32  ;;  %v374_v60 = vrot.slane %v217_v45, 2  ;;  %v371_v63 = vrot.slane %v1815_v49, 2  ;;  %v1865_v37 = vld [vmem:[%s1641_s5 + $0xd8] sm:$0xff] }
  0x28   : > { %v368_v54 = vsel %vm340_vm4, %v366_v43, %v367_v38 }
  0x29   : > { %302 = vrot.lane.b32.xlu1 %v266_v39, %s1568_s6  ;;  %300 = vrot.lane.b32.xlu0 %v264_v42, %s1568_s6  ;;  %v281_v39 = vsel %vm251_vm3, %v278_v32, %v280_v36  ;;  %v369_v42 = vrot.slane %v214_v29, 2  ;;  %v375_v11 = vsel %vm340_vm4, %v372_v57, %v374_v60  ;;  %v373_v14 = vsel %vm340_vm4, %v371_v63, %v372_v57 }
  0x2b   : > { %v370_v51 = vsel %vm340_vm4, %v367_v38, %v369_v42 }
  0x2d   : > { %391 = vrot.lane.b32.xlu1 %v355_v55, %s1569_s7  ;;  %389 = vrot.lane.b32.xlu0 %v353_v56, %s1569_s7  ;;  %v285_v55 = vrot.slane %v217_v45, 1  ;;  %v282_v56 = vrot.slane %v1815_v49, 1 }
  0x2f   : > { %v286_v58 = vsel %vm251_vm3, %v283_v50, %v285_v55  ;;  %v284_v59 = vsel %vm251_vm3, %v282_v56, %v283_v50 }
  0x31   : > { %306 = vrot.lane.b32.xlu1 %v271_v0, %s1568_s6  ;;  %304 = vrot.lane.b32.xlu0 %v269_v1, %s1568_s6  ;;  %v1830_v0 = vld [vmem:[%s1641_s5 + $0xb0] sm:$0xff]  ;;  %v220_v1 = vld [vmem:[%s1641_s5 + $0xb8] sm:$0x3] }
  0x32   : > { %v288_v4 = vrot.slane %v1830_v0, 1  ;;  %v290_v18 = vrot.slane %v220_v1, 1  ;;  %v379_v23 = vrot.slane %v220_v1, 2 }
  0x34   : > { %v291_v21 = vsel %vm251_vm3, %v288_v4, %v290_v18 }
  0x35   : > { %395 = vrot.lane.b32.xlu1 %v360_v19, %s1569_s7  ;;  %393 = vrot.lane.b32.xlu0 %v358_v20, %s1569_s7  ;;  %v287_v19 = vrot.slane %v1834_v2, 1  ;;  %v377_v20 = vrot.slane %v1830_v0, 2 }
  0x37   : > { %v289_v22 = vsel %vm251_vm3, %v287_v19, %v288_v4  ;;  %v380_v26 = vsel %vm340_vm4, %v377_v20, %v379_v23 }
  0x39   : > { %310 = vrot.lane.b32.xlu1 %v276_v24, %s1568_s6  ;;  %308 = vrot.lane.b32.xlu0 %v274_v25, %s1568_s6  ;;  %v376_v24 = vrot.slane %v1834_v2, 2  ;;  %v1849_v25 = vld [vmem:[%s1641_s5 + $0xc0] sm:$0xff] }
  0x3a   : > { %v468_v29 = vrot.slane %v1849_v25, 1  ;;  %v479_v36 = vrot.slane %v1849_v25, 2 }
  0x3b   : > { %v378_v27 = vsel %vm340_vm4, %v376_v24, %v377_v20 }
  0x3c   : > { %v470_v32 = vsel %vm251_vm3, %v468_v29, %v469_v52  ;;  %v863_v52 = vrot.slane %v1865_v37, 2 }
  0x3d   : > { %399 = vrot.lane.b32.xlu1 %v365_v34, %s1569_s7  ;;  %397 = vrot.lane.b32.xlu0 %v363_v35, %s1569_s7  ;;  %v480_v34 = vrot.slane %v1721_v47, 2  ;;  %v482_v35 = vrot.slane %v1724_v48, 2 }
  0x3f   : > { %v483_v38 = vsel %vm340_vm4, %v480_v34, %v482_v35 }
  0x41   : > { %314 = vrot.lane.b32.xlu1 %v281_v39, %s1568_s6  ;;  %312 = vrot.lane.b32.xlu0 %v279_v41, %s1568_s6  ;;  %v481_v39 = vsel %vm340_vm4, %v479_v36, %v480_v34  ;;  %v852_v41 = vrot.slane %v1865_v37, 1 }
  0x43   : > { %v854_v48 = vsel %vm251_vm3, %v852_v41, %v853_v62 }
  0x45   : > { %403 = vrot.lane.b32.xlu1 %v370_v51, %s1569_s7  ;;  %401 = vrot.lane.b32.xlu0 %v368_v54, %s1569_s7 }
  0x49   : > { %318 = vrot.lane.b32.xlu1 %v286_v58, %s1568_s6  ;;  %316 = vrot.lane.b32.xlu0 %v284_v59, %s1568_s6 }
  0x4d   : > { %407 = vrot.lane.b32.xlu1 %v375_v11, %s1569_s7  ;;  %405 = vrot.lane.b32.xlu0 %v373_v14, %s1569_s7 }
  0x51   : > { %322 = vrot.lane.b32.xlu1 %v291_v21, %s1568_s6  ;;  %320 = vrot.lane.b32.xlu0 %v289_v22, %s1568_s6 }
  0x55   : > { %411 = vrot.lane.b32.xlu1 %v380_v26, %s1569_s7  ;;  %409 = vrot.lane.b32.xlu0 %v378_v27, %s1569_s7 }
  0x59   : > { %475 = vrot.lane.b32.xlu1 %v1748_v61, %s1568_s6  ;;  %473 = vrot.lane.b32.xlu0 %v470_v32, %s1568_s6  ;;  %v865_v61 = vsel %vm340_vm4, %v863_v52, %v864_v3 }
  0x5d   : > { %486 = vrot.lane.b32.xlu1 %v483_v38, %s1569_s7  ;;  %484 = vrot.lane.b32.xlu0 %v481_v39, %s1569_s7 }
  0x61   : > { %857 = vrot.lane.b32.xlu0 %v854_v48, %s1568_s6  ;;  %859 = vrot.lane.b32.xlu1 %v1763_v10, %s1568_s6 }
  0x65   : > { %868 = vrot.lane.b32.xlu0 %v865_v61, %s1569_s7  ;;  %870 = vrot.lane.b32.xlu1 %v1774_v16, %s1569_s7 }
  0x8b   : > { %v295_v42 = vpop.permute.xlu1 %294  ;;  %v293_v43 = vpop.permute.xlu0 %292 }
  0x8c   : > { %v430_v50 = vsel %vm429_vm5, %v1654_v9, %v293_v43  ;;  %v431_v16 = vsel %vm429_vm5, %v1650_v7, %v295_v42 }
  0x8f   : > { %v299_v45 = vpop.permute.xlu1 %298  ;;  %v297_v62 = vpop.permute.xlu0 %296 }
  0x90   : > { %v432_v10 = vsel %vm429_vm5, %v1671_v17, %v297_v62  ;;  %v433_v56 = vsel %vm429_vm5, %v1661_v13, %v299_v45 }
  0x93   : > { %v386_v51 = vpop.permute.xlu1 %385  ;;  %v382_v3 = vpop.permute.xlu0 %381 }
  0x94   : > { %v449_v54 = vsel %vm446_vm6, %v432_v10, %v386_v51  ;;  %v447_v55 = vsel %vm446_vm6, %v430_v50, %v382_v3 }
  0x95   : > { %1351 = vmatprep.mubr.msk.f32.mxu1 %vm497_vm7, %v449_v54  ;;  %1379 = vmatprep.mubr.msk.f32.mxu0 %vm497_vm7, %v447_v55 }
  0x97   : > { %v388_v9 = vpop.permute.xlu1 %387  ;;  %v384_v57 = vpop.permute.xlu0 %383 }
  0x98   : > { %v450_v17 = vsel %vm446_vm6, %v433_v56, %v388_v9  ;;  %v448_v58 = vsel %vm446_vm6, %v431_v16, %v384_v57 }
  0x99   : > { %1352 = vmatmul.mubr.msk.f32.vlgmr.msra.gmra.mrb[0].mxu1 %vm497_vm7, %v450_v17  ;;  %1380 = vmatmul.mubr.msk.f32.vlgmr.msra.gmra.mrb[0].mxu0 %vm497_vm7, %v448_v58 }
  0x9a   : > { %1382 = vmatprep.mubr.msk.f32.mxu0 %vm497_vm7, %v449_v54  ;;  %1448 = vmatpush3.bf16.msk.msra.mxu0 %vm1643_vm2, %v1765_v12 }
  0x9b   : > { %v303_v7 = vpop.permute.xlu1 %302  ;;  %v301_v59 = vpop.permute.xlu0 %300  ;;  %1450 = vmatpush3.bf16.msk.msra.mxu1 %vm1643_vm2, %v1647_v6 }
  0x9c   : > { %v435_v13 = vsel %vm429_vm5, %v1695_v31, %v303_v7  ;;  %v434_v60 = vsel %vm429_vm5, %v1699_v33, %v301_v59 }
  0x9d   : > { %1383 = vmatmul.mubr.msk.f32.gmra.mrb[2].mxu0 %vm497_vm7, %v450_v17 }
  0x9f   : > { %v392_v63 = vpop.permute.xlu1 %391  ;;  %v390_v1 = vpop.permute.xlu0 %389 }
  0xa0   : > { %v452_v4 = vsel %vm446_vm6, %v435_v13, %v392_v63  ;;  %v451_v12 = vsel %vm446_vm6, %v434_v60, %v390_v1 }
  0xa1   : > { %1354 = vmatprep.mubr.msk.f32.mxu1 %vm497_vm7, %v451_v12  ;;  %1385 = vmatprep.mubr.msk.f32.mxu0 %vm497_vm7, %v451_v12 }
  0xa2   : > { %1355 = vmatmul.mubr.msk.f32.gmra.mrb[2].mxu1 %vm497_vm7, %v452_v4  ;;  %1386 = vmatmul.mubr.msk.f32.gmra.mrb[4].mxu0 %vm497_vm7, %v452_v4 }
  0xa3   : > { %v307_v5 = vpop.permute.xlu1 %306  ;;  %v305_v6 = vpop.permute.xlu0 %304 }
  0xa4   : > { %v437_v31 = vsel %vm429_vm5, %v1711_v40, %v307_v5  ;;  %v436_v33 = vsel %vm429_vm5, %v1718_v46, %v305_v6 }
  0xa7   : > { %v396_v11 = vpop.permute.xlu1 %395  ;;  %v394_v14 = vpop.permute.xlu0 %393 }
  0xa8   : > { %v454_v18 = vsel %vm446_vm6, %v437_v31, %v396_v11  ;;  %v453_v19 = vsel %vm446_vm6, %v436_v33, %v394_v14 }
  0xa9   : > { %1357 = vmatprep.mubr.msk.f32.mxu1 %vm497_vm7, %v453_v19  ;;  %1388 = vmatprep.mubr.msk.f32.mxu0 %vm497_vm7, %v453_v19 }
  0xaa   : > { %1358 = vmatmul.mubr.msk.f32.gmra.mrb[4].mxu1 %vm497_vm7, %v454_v18  ;;  %1389 = vmatmul.mubr.msk.f32.gmra.mrb[6].mxu0 %vm497_vm7, %v454_v18 }
  0xab   : > { %v311_v20 = vpop.permute.xlu1 %310  ;;  %1407 = vmatprep.mubr.msk.f32.mxu0 %vm497_vm7, %v451_v12  ;;  %v309_v40 = vpop.permute.xlu0 %308  ;;  %v2007_v12 = vld [vmem:[%s2063_s2] ss:$0 sm:$0xff] }
  0xac   : > { %v439_v46 = vsel %vm429_vm5, %v1758_v8, %v311_v20  ;;  %v438_v21 = vsel %vm429_vm5, %v1769_v15, %v309_v40 }
  0xae   : > { %1408 = vmatmul.mubr.msk.f32.vlgmr.msra.gmra.mrb[0].mxu0 %vm497_vm7, %v452_v4 }
  0xaf   : > { %v400_v22 = vpop.permute.xlu1 %399  ;;  %1410 = vmatprep.mubr.msk.f32.mxu0 %vm497_vm7, %v453_v19  ;;  %v398_v23 = vpop.permute.xlu0 %397 }
  0xb0   : > { %v456_v24 = vsel %vm446_vm6, %v439_v46, %v400_v22  ;;  %v455_v26 = vsel %vm446_vm6, %v438_v21, %v398_v23 }
  0xb1   : > { %1360 = vmatprep.mubr.msk.f32.mxu1 %vm497_vm7, %v455_v26 }
  0xb2   : > { %1361 = vmatmul.mubr.msk.f32.gmra.mrb[6].mxu1 %vm497_vm7, %v456_v24  ;;  %1411 = vmatmul.mubr.msk.f32.gmra.mrb[2].mxu0 %vm497_vm7, %v454_v18 }
  0xb3   : > { %v315_v27 = vpop.permute.xlu1 %314  ;;  %1413 = vmatprep.mubr.msk.f32.mxu0 %vm497_vm7, %v455_v26  ;;  %v313_v8 = vpop.permute.xlu0 %312 }
  0xb4   : > { %v441_v15 = vsel %vm429_vm5, %v1792_v28, %v315_v27  ;;  %v440_v29 = vsel %vm429_vm5, %v1796_v30, %v313_v8 }
  0xb6   : > { %1414 = vmatmul.mubr.msk.f32.gmra.mrb[4].mxu0 %vm497_vm7, %v456_v24 }
  0xb7   : > { %v404_v32 = vpop.permute.xlu1 %403  ;;  %v402_v34 = vpop.permute.xlu0 %401 }
  0xb8   : > { %v458_v35 = vsel %vm446_vm6, %v441_v15, %v404_v32  ;;  %v457_v36 = vsel %vm446_vm6, %v440_v29, %v402_v34 }
  0xb9   : > { %1363 = vmatprep.mubr.msk.f32.mxu1 %vm497_vm7, %v457_v36  ;;  %1416 = vmatprep.mubr.msk.f32.mxu0 %vm497_vm7, %v457_v36 }
  0xba   : > { %1364 = vmatmul.mubr.msk.f32.gmra.mrb[8].mxu1 %vm497_vm7, %v458_v35  ;;  %1417 = vmatmul.mubr.msk.f32.gmra.mrb[6].mxu0 %vm497_vm7, %v458_v35 }
  0xbb   : > { %v319_v38 = vpop.permute.xlu1 %318  ;;  %v317_v39 = vpop.permute.xlu0 %316 }
  0xbc   : > { %v443_v28 = vsel %vm429_vm5, %v1811_v44, %v319_v38  ;;  %v442_v30 = vsel %vm429_vm5, %v1815_v49, %v317_v39 }
  0xbf   : > { %v408_v41 = vpop.permute.xlu1 %407  ;;  %v406_v48 = vpop.permute.xlu0 %405 }
  0xc0   : > { %v460_v52 = vsel %vm446_vm6, %v443_v28, %v408_v41  ;;  %v459_v61 = vsel %vm446_vm6, %v442_v30, %v406_v48 }
  0xc1   : > { %1366 = vmatprep.mubr.msk.f32.mxu1 %vm497_vm7, %v459_v61  ;;  %1419 = vmatprep.mubr.msk.f32.mxu0 %vm497_vm7, %v459_v61 }
  0xc2   : > { %1367 = vmatmul.mubr.msk.f32.gmra.mrb[10].mxu1 %vm497_vm7, %v460_v52  ;;  %1420 = vmatmul.mubr.msk.f32.gmra.mrb[8].mxu0 %vm497_vm7, %v460_v52 }
  0xc3   : > { %v323_v42 = vpop.permute.xlu1 %322  ;;  %v321_v43 = vpop.permute.xlu0 %320 }
  0xc4   : > { %v445_v44 = vsel %vm429_vm5, %v1830_v0, %v323_v42  ;;  %v444_v49 = vsel %vm429_vm5, %v1834_v2, %v321_v43 }
  0xc7   : > { %v412_v45 = vpop.permute.xlu1 %411  ;;  %v410_v62 = vpop.permute.xlu0 %409 }
  0xc8   : > { %v462_v50 = vsel %vm446_vm6, %v445_v44, %v412_v45  ;;  %v461_v10 = vsel %vm446_vm6, %v444_v49, %v410_v62 }
  0xc9   : > { %1369 = vmatprep.mubr.msk.f32.mxu1 %vm497_vm7, %v461_v10  ;;  %1422 = vmatprep.mubr.msk.f32.mxu0 %vm497_vm7, %v461_v10 }
  0xca   : > { %1370 = vmatmul.mubr.msk.f32.gmra.mrb[12].mxu1 %vm497_vm7, %v462_v50  ;;  %1423 = vmatmul.mubr.msk.f32.gmra.mrb[10].mxu0 %vm497_vm7, %v462_v50 }
  0xcb   : > { %v476_v51 = vpop.permute.xlu1 %475  ;;  %v474_v3 = vpop.permute.xlu0 %473 }
  0xcc   : > { %v491_v0 = vsel %vm429_vm5, %v1721_v47, %v476_v51  ;;  %v490_v2 = vsel %vm429_vm5, %v1849_v25, %v474_v3 }
  0xcf   : > { %v487_v54 = vpop.permute.xlu1 %486  ;;  %v485_v55 = vpop.permute.xlu0 %484 }
  0xd0   : > { %v493_v16 = vsel %vm446_vm6, %v491_v0, %v487_v54  ;;  %v492_v56 = vsel %vm446_vm6, %v490_v2, %v485_v55 }
  0xd1   : > { %1372 = vmatprep.mubr.msk.f32.mxu1 %vm497_vm7, %v492_v56  ;;  %1425 = vmatprep.mubr.msk.f32.mxu0 %vm497_vm7, %v492_v56 }
  0xd2   : > { %1373 = vmatmul.mubr.msk.f32.gmra.mrb[14].mxu1 %vm497_vm7, %v493_v16  ;;  %1426 = vmatmul.mubr.msk.f32.gmra.mrb[12].mxu0 %vm497_vm7, %v493_v16 }
  0xd3   : > { %1391 = vmatprep.mubr.msk.f32.mxu1 %vm497_vm7, %v455_v26  ;;  %v858_v47 = vpop.permute.xlu0 %857  ;;  %v860_v9 = vpop.permute.xlu1 %859 }
  0xd4   : > { %v874_v25 = vsel %vm429_vm5, %v1865_v37, %v858_v47  ;;  %v875_v57 = vsel %vm429_vm5, %v1732_v53, %v860_v9 }
  0xd6   : > { %1392 = vmatmul.mubr.msk.f32.vlgmr.msra.gmra.mrb[8].mxu1 %vm497_vm7, %v456_v24 }
  0xd7   : > { %1394 = vmatprep.mubr.msk.f32.mxu1 %vm497_vm7, %v457_v36  ;;  %v869_v17 = vpop.permute.xlu0 %868  ;;  %v871_v58 = vpop.permute.xlu1 %870 }
  0xd8   : > { %v876_v7 = vsel %vm446_vm6, %v874_v25, %v869_v17  ;;  %v877_v59 = vsel %vm446_vm6, %v875_v57, %v871_v58 }
  0xd9   : > { %1428 = vmatprep.mubr.msk.f32.mxu0 %vm497_vm7, %v876_v7 }
  0xda   : > { %1395 = vmatmul.mubr.msk.f32.gmra.mrb[10].mxu1 %vm497_vm7, %v458_v35  ;;  %1429 = vmatmul.mubr.msk.f32.gmra.mrb[14].mxu0 %vm497_vm7, %v877_v59 }
  0xdb   : > { %1397 = vmatprep.mubr.msk.f32.mxu1 %vm497_vm7, %v459_v61 }
  0xde   : > { %1398 = vmatmul.mubr.msk.f32.gmra.mrb[12].mxu1 %vm497_vm7, %v460_v52 }
  0xdf   : > { %1400 = vmatprep.mubr.msk.f32.mxu1 %vm497_vm7, %v461_v10 }
  0xe2   : > { %1401 = vmatmul.mubr.msk.f32.gmra.mrb[14].mxu1 %vm497_vm7, %v462_v50 }
 0x16c   : > { %v1353_v53 = vpop.f32.mrb[0].mxu1 }
 0x16d   : > { %v616_v37 = vpop.f32.mrb[1].mxu1 }
 0x175   : > { %v1356_v13 = vpop.f32.mrb[2].mxu1 }
 0x176   : > { %v626_v60 = vpop.f32.mrb[3].mxu1 }
 0x17d   : > { %v1359_v63 = vpop.f32.mrb[4].mxu1 }
 0x17e   : > { %v636_v1 = vpop.f32.mrb[5].mxu1 }
 0x181   : > { %v1409_v4 = vpop.f32.mrb[0].mxu0 }
 0x182   : > { %v1451_v5 = vadd.f32 %v1409_v4, %v1353_v53  ;;  %v956_v6 = vpop.f32.mrb[1].mxu0 }
 0x183   : > { %v1452_v31 = vadd.f32 %v956_v6, %v616_v37 }
 0x184   : > { %v1059_v33 = vadd.f32 %v1451_v5, %v2007_v12 }
 0x185   : > { %v1058_v11 = vadd.f32 %v1452_v31, %v2007_v12  ;;  %v1362_v14 = vpop.f32.mrb[6].mxu1  ;;  %v1412_v18 = vpop.f32.mrb[2].mxu0 }
 0x186   : > { %vm1075_vm8 = vcmp.gt.f32.partialorder %v1059_v33, 0.0  ;;  %v1091_v19 = vmul.f32 0.1, %v1059_v33  ;;  %v1453_v20 = vadd.f32 %v1412_v18, %v1356_v13  ;;  %v646_v40 = vpop.f32.mrb[7].mxu1  ;;  %v966_v46 = vpop.f32.mrb[3].mxu0 }
 0x187   : > { %vm1074_vm9 = vcmp.gt.f32.partialorder %v1058_v11, 0.0  ;;  %v1090_v21 = vmul.f32 0.1, %v1058_v11  ;;  %v1454_v22 = vadd.f32 %v966_v46, %v626_v60 }
 0x188   : > { %v1107_v23 = vsel %vm1075_vm8, %v1059_v33, %v1091_v19  ;;  %v1061_v24 = vadd.f32 %v1453_v20, %v2007_v12 }
 0x189   : > { %1123 = vst [vmem:[%s2014_s25 + $0x8] sm:$0xff] %v1107_v23  ;;  %v1106_v26 = vsel %vm1074_vm9, %v1058_v11, %v1090_v21  ;;  %v1060_v27 = vadd.f32 %v1454_v22, %v2007_v12  ;;  %v1415_v8 = vpop.f32.mrb[4].mxu0 }
 0x18a   : > { %1122 = vst [vmem:[%s2014_s25] sm:$0xff] %v1106_v26  ;;  %vm1077_vm10 = vcmp.gt.f32.partialorder %v1061_v24, 0.0  ;;  %v1093_v15 = vmul.f32 0.1, %v1061_v24  ;;  %v1455_v29 = vadd.f32 %v1415_v8, %v1359_v63  ;;  %v976_v32 = vpop.f32.mrb[5].mxu0 }
 0x18b   : > { %vm1076_vm11 = vcmp.gt.f32.partialorder %v1060_v27, 0.0  ;;  %v1092_v34 = vmul.f32 0.1, %v1060_v27  ;;  %v1456_v35 = vadd.f32 %v976_v32, %v636_v1 }
 0x18c   : > { %v1109_v36 = vsel %vm1077_vm10, %v1061_v24, %v1093_v15  ;;  %v1063_v38 = vadd.f32 %v1455_v29, %v2007_v12 }
 0x18d   : > { %1125 = vst [vmem:[%s2014_s25 + $0x18] sm:$0xff] %v1109_v36  ;;  %v1108_v39 = vsel %vm1076_vm11, %v1060_v27, %v1092_v34  ;;  %v1062_v28 = vadd.f32 %v1456_v35, %v2007_v12  ;;  %v1418_v30 = vpop.f32.mrb[6].mxu0 }
 0x18e   : > { %1124 = vst [vmem:[%s2014_s25 + $0x10] sm:$0xff] %v1108_v39  ;;  %vm1079_vm12 = vcmp.gt.f32.partialorder %v1063_v38, 0.0  ;;  %v1095_v41 = vmul.f32 0.1, %v1063_v38  ;;  %v1457_v48 = vadd.f32 %v1418_v30, %v1362_v14  ;;  %v986_v52 = vpop.f32.mrb[7].mxu0 }
 0x18f   : > { %vm1078_vm13 = vcmp.gt.f32.partialorder %v1062_v28, 0.0  ;;  %v1094_v61 = vmul.f32 0.1, %v1062_v28  ;;  %v1458_v42 = vadd.f32 %v986_v52, %v646_v40 }
 0x190   : > { %v1111_v43 = vsel %vm1079_vm12, %v1063_v38, %v1095_v41  ;;  %v1065_v44 = vadd.f32 %v1457_v48, %v2007_v12 }
 0x191   : > { %1127 = vst [vmem:[%s2014_s25 + $0x28] sm:$0xff] %v1111_v43  ;;  %v1110_v49 = vsel %vm1078_vm13, %v1062_v28, %v1094_v61  ;;  %v1064_v45 = vadd.f32 %v1458_v42, %v2007_v12 }
 0x192   : > { %1126 = vst [vmem:[%s2014_s25 + $0x20] sm:$0xff] %v1110_v49  ;;  %vm1081_vm14 = vcmp.gt.f32.partialorder %v1065_v44, 0.0  ;;  %v1097_v62 = vmul.f32 0.1, %v1065_v44 }
 0x193   : > { %vm1080_vm15 = vcmp.gt.f32.partialorder %v1064_v45, 0.0  ;;  %v1096_v50 = vmul.f32 0.1, %v1064_v45 }
 0x194   : > { %v1113_v10 = vsel %vm1081_vm14, %v1065_v44, %v1097_v62 }
 0x195   : > { %1129 = vst [vmem:[%s2014_s25 + $0x38] sm:$0xff] %v1113_v10  ;;  %v1112_v51 = vsel %vm1080_vm15, %v1064_v45, %v1096_v50  ;;  %v1421_v3 = vpop.f32.mrb[8].mxu0 }
 0x196   : > { %1128 = vst [vmem:[%s2014_s25 + $0x30] sm:$0xff] %v1112_v51  ;;  %v996_v0 = vpop.f32.mrb[9].mxu0 }
 0x19d   : > { %v1424_v2 = vpop.f32.mrb[10].mxu0 }
 0x19e   : > { %v1006_v54 = vpop.f32.mrb[11].mxu0 }
 0x1a5   : > { %v1427_v55 = vpop.f32.mrb[12].mxu0 }
 0x1a6   : > { %v1016_v16 = vpop.f32.mrb[13].mxu0 }
 0x1a9   : > { %v1393_v56 = vpop.f32.mrb[8].mxu1 }
 0x1aa   : > { %v1459_v47 = vadd.f32 %v1421_v3, %v1393_v56  ;;  %v810_v9 = vpop.f32.mrb[9].mxu1 }
 0x1ab   : > { %v1460_v25 = vadd.f32 %v996_v0, %v810_v9 }
 0x1ac   : > { %v1067_v57 = vadd.f32 %v1459_v47, %v2007_v12 }
 0x1ad   : > { %v1066_v17 = vadd.f32 %v1460_v25, %v2007_v12  ;;  %v1396_v58 = vpop.f32.mrb[10].mxu1  ;;  %v1430_v7 = vpop.f32.mrb[14].mxu0 }
 0x1ae   : > { %vm1083_vm0 = vcmp.gt.f32.partialorder %v1067_v57, 0.0  ;;  %v1099_v59 = vmul.f32 0.1, %v1067_v57  ;;  %v1461_v53 = vadd.f32 %v1424_v2, %v1396_v58  ;;  %v820_v37 = vpop.f32.mrb[11].mxu1  ;;  %v1026_v13 = vpop.f32.mrb[15].mxu0 }
 0x1af   : > { %vm1082_vm1 = vcmp.gt.f32.partialorder %v1066_v17, 0.0  ;;  %v1098_v60 = vmul.f32 0.1, %v1066_v17  ;;  %v1462_v63 = vadd.f32 %v1006_v54, %v820_v37 }
 0x1b0   : > { %v1115_v1 = vsel %vm1083_vm0, %v1067_v57, %v1099_v59  ;;  %v1069_v4 = vadd.f32 %v1461_v53, %v2007_v12 }
 0x1b1   : > { %1131 = vst [vmem:[%s2014_s25 + $0x48] sm:$0xff] %v1115_v1  ;;  %v1114_v5 = vsel %vm1082_vm1, %v1066_v17, %v1098_v60  ;;  %v1068_v6 = vadd.f32 %v1462_v63, %v2007_v12  ;;  %v1399_v31 = vpop.f32.mrb[12].mxu1 }
 0x1b2   : > { %1130 = vst [vmem:[%s2014_s25 + $0x40] sm:$0xff] %v1114_v5  ;;  %vm1085_vm2 = vcmp.gt.f32.partialorder %v1069_v4, 0.0  ;;  %v1101_v33 = vmul.f32 0.1, %v1069_v4  ;;  %v1463_v11 = vadd.f32 %v1427_v55, %v1399_v31  ;;  %v830_v14 = vpop.f32.mrb[13].mxu1 }
 0x1b3   : > { %vm1084_vm3 = vcmp.gt.f32.partialorder %v1068_v6, 0.0  ;;  %v1100_v18 = vmul.f32 0.1, %v1068_v6  ;;  %v1464_v19 = vadd.f32 %v1016_v16, %v830_v14 }
 0x1b4   : > { %v1117_v20 = vsel %vm1085_vm2, %v1069_v4, %v1101_v33  ;;  %v1071_v40 = vadd.f32 %v1463_v11, %v2007_v12 }
 0x1b5   : > { %1133 = vst [vmem:[%s2014_s25 + $0x58] sm:$0xff] %v1117_v20  ;;  %v1116_v46 = vsel %vm1084_vm3, %v1068_v6, %v1100_v18  ;;  %v1070_v21 = vadd.f32 %v1464_v19, %v2007_v12  ;;  %v1402_v22 = vpop.f32.mrb[14].mxu1 }
 0x1b6   : > { %1132 = vst [vmem:[%s2014_s25 + $0x50] sm:$0xff] %v1116_v46  ;;  %vm1087_vm4 = vcmp.gt.f32.partialorder %v1071_v40, 0.0  ;;  %v1103_v23 = vmul.f32 0.1, %v1071_v40  ;;  %v1465_v24 = vadd.f32 %v1430_v7, %v1402_v22  ;;  %v840_v26 = vpop.f32.mrb[15].mxu1 }
 0x1b7   : > { %vm1086_vm5 = vcmp.gt.f32.partialorder %v1070_v21, 0.0  ;;  %v1102_v27 = vmul.f32 0.1, %v1070_v21  ;;  %v1466_v8 = vadd.f32 %v1026_v13, %v840_v26 }
 0x1b8   : > { %v1119_v15 = vsel %vm1087_vm4, %v1071_v40, %v1103_v23  ;;  %v1073_v29 = vadd.f32 %v1465_v24, %v2007_v12 }
 0x1b9   : > { %1135 = vst [vmem:[%s2014_s25 + $0x68] sm:$0xff] %v1119_v15  ;;  %v1118_v32 = vsel %vm1086_vm5, %v1070_v21, %v1102_v27  ;;  %v1072_v34 = vadd.f32 %v1466_v8, %v2007_v12 }
 0x1ba   : > { %1134 = vst [vmem:[%s2014_s25 + $0x60] sm:$0xff] %v1118_v32  ;;  %vm1089_vm6 = vcmp.gt.f32.partialorder %v1073_v29, 0.0  ;;  %v1105_v35 = vmul.f32 0.1, %v1073_v29 }
 0x1bb   : > { %vm1088_vm7 = vcmp.gt.f32.partialorder %v1072_v34, 0.0  ;;  %v1104_v36 = vmul.f32 0.1, %v1072_v34 }
 0x1bc   : > { %v1121_v38 = vsel %vm1089_vm6, %v1073_v29, %v1105_v35 }
 0x1bd   : > { %1137 = vst [vmem:[%s2014_s25 + $0x78] sm:$0xff] %v1121_v38  ;;  %v1120_v39 = vsel %vm1088_vm7, %v1072_v34, %v1104_v36 }
 0x1be   : > { %1136 = vst [vmem:[%s2014_s25 + $0x70] sm:$0xff] %v1120_v39 }
 0x1bf PF: > { %s13_s16 = sadd.s32 1, %s1565_s16   ;;  %s2067_s12 = smov %s1557_s14 }
 0x1c0   : > { %p10_p7 = scmp.ge.s32.totalorder %s13_s16, 6   ;;  %s2068_s13 = smov %s1561_s15 }
 0x1c1   : > { %s2069_s14 = smov %s2072_s17  ;;  %s2070_s15 = smov %s2076_s18 }
 0x1c2   :  { %12 = sbr.rel (!%p10_p7) target bundleno = 3 (0x3), region = 65 }

</bundles_post_ra>
